<compile_context>
chip_gen: v6e
topology: v6e:2x2x1
jax: 0.10.0
libtpu: 0.0.40
codegen_flags: <defaults>
</compile_context>

<pallas_src>
import jax
import jax.numpy as jnp
from jax.experimental import pallas as pl
from jax.experimental.pallas import tpu as pltpu

# Module hyper-parameters (the PyTorch file leaves them as globals; pick small,
# MLP-consistent values).
INPUT_NUM = 256      # = 1 * 16 * 16
HIDDEN_NUM_1 = 128
HIDDEN_NUM_2 = 64
OUTPUT_NUM = 10
OUT_PADDED = 128     # lane-dense output width (wrapper slices back to 10)

MAX_TILE_B = 256     # batch tile (multiple of 8 for f32 / 16 for bf16 sublanes)


def mlp_kernel(x_ref, w1_ref, b1_ref, w2_ref, b2_ref, w3_ref, b3_ref, out_ref):
    """One batch tile: fc1+relu -> fc2+relu -> fc3+softmax, f32 accumulate."""
    x = x_ref[...]                                     # (TILE_B, 256) bf16

    # fc1 + relu (bf16 operands, f32 accumulate)
    h1 = jnp.dot(x, w1_ref[...], preferred_element_type=jnp.float32) + b1_ref[...]
    h1 = jnp.maximum(h1, 0.0).astype(jnp.bfloat16)

    # fc2 + relu
    h2 = jnp.dot(h1, w2_ref[...], preferred_element_type=jnp.float32) + b2_ref[...]
    h2 = jnp.maximum(h2, 0.0).astype(jnp.bfloat16)

    # fc3 (lane-padded to 128) + numerically stable softmax over the 10 logical
    # classes; padded lanes are masked to -inf so they contribute exp(...) = 0.
    logits = jnp.dot(h2, w3_ref[...], preferred_element_type=jnp.float32) + b3_ref[...]
    col = jax.lax.broadcasted_iota(jnp.int32, logits.shape, 1)
    logits = jnp.where(col < OUTPUT_NUM, logits, jnp.float32(-1e30))

    m = jnp.max(logits, axis=1, keepdims=True)
    e = jnp.exp(logits - m)
    denom = jnp.sum(e, axis=1, keepdims=True)
    out_ref[...] = (e * pl.reciprocal(denom, approx=True)).astype(out_ref.dtype)


def mlp_forward(x, params):
    """x: any shape that flattens to (-1, INPUT_NUM), matching din.view(-1, input_num)."""
    w1, b1, w2, b2, w3, b3 = params
    x2d = x.reshape(-1, INPUT_NUM)          # glue: view(-1, input_num)
    batch = x2d.shape[0]

    # Batch tile: multiple of 8, capped at MAX_TILE_B; pad the batch up to a
    # whole number of tiles (padded rows are sliced off after the call).
    tile_b = min(MAX_TILE_B, pl.cdiv(batch, 8) * 8)
    padded_batch = pl.cdiv(batch, tile_b) * tile_b
    if padded_batch != batch:
        x2d = jnp.pad(x2d, ((0, padded_batch - batch), (0, 0)))

    # bf16 matmul operands; biases stay f32 (added to the f32 accumulator).
    x_bf = x2d.astype(jnp.bfloat16)
    w1_bf = w1.astype(jnp.bfloat16)
    w2_bf = w2.astype(jnp.bfloat16)
    w3_bf = jnp.pad(w3, ((0, 0), (0, OUT_PADDED - OUTPUT_NUM))).astype(jnp.bfloat16)
    b3_p = jnp.pad(b3, ((0, 0), (0, OUT_PADDED - OUTPUT_NUM)))

    grid = (padded_batch // tile_b,)
    resident = lambda shape: pl.BlockSpec(shape, lambda i: (0, 0))  # VMEM-resident weights

    out = pl.pallas_call(
        mlp_kernel,
        out_shape=jax.ShapeDtypeStruct((padded_batch, OUT_PADDED), jnp.float32),
        grid=grid,
        in_specs=[
            pl.BlockSpec((tile_b, INPUT_NUM), lambda i: (i, 0)),   # x tile (pipelined)
            resident((INPUT_NUM, HIDDEN_NUM_1)),
            resident((1, HIDDEN_NUM_1)),
            resident((HIDDEN_NUM_1, HIDDEN_NUM_2)),
            resident((1, HIDDEN_NUM_2)),
            resident((HIDDEN_NUM_2, OUT_PADDED)),
            resident((1, OUT_PADDED)),
        ],
        out_specs=pl.BlockSpec((tile_b, OUT_PADDED), lambda i: (i, 0)),
        compiler_params=pltpu.CompilerParams(
            dimension_semantics=("parallel",),   # 2-TC sharding on v7x; no-op on v5e/v6e
        ),
    )(x_bf, w1_bf, b1, w2_bf, b2, w3_bf, b3_p)

    return out[:batch, :OUTPUT_NUM]


def init_params(key):
    """Deterministic init mimicking torch.nn.Linear default (U[-1/sqrt(fan_in), +...])."""
    def linear(key, fan_in, fan_out):
        kw, kb = jax.random.split(key)
        bound = 1.0 / jnp.sqrt(fan_in)
        w = jax.random.uniform(kw, (fan_in, fan_out), jnp.float32, -bound, bound)
        b = jax.random.uniform(kb, (1, fan_out), jnp.float32, -bound, bound)
        return w, b

    k1, k2, k3 = jax.random.split(key, 3)
    w1, b1 = linear(k1, INPUT_NUM, HIDDEN_NUM_1)
    w2, b2 = linear(k2, HIDDEN_NUM_1, HIDDEN_NUM_2)
    w3, b3 = linear(k3, HIDDEN_NUM_2, OUTPUT_NUM)
    return (w1, b1, w2, b2, w3, b3)


if __name__ == "__main__":
    key = jax.random.PRNGKey(0)
    kx, kp = jax.random.split(key)

    # Small NCHW-like input [2, 1, 16, 16]; forward flattens it to (2, 256).
    # NOTE: at batch=2 this is entirely overhead-bound; the tiling/bf16/lane
    # padding wins only materialize at realistic batch sizes.
    x = jax.random.normal(kx, (2, 1, 16, 16), jnp.float32)
    params = init_params(kp)

    out = mlp_forward(x, params)
    out = jax.block_until_ready(out)

    # Sanity: correct shape, softmax rows sum to ~1 (bf16 operands + approx
    # reciprocal introduce small expected deviations vs the exact f32 path).
    assert out.shape == (2, OUTPUT_NUM)
    assert jnp.allclose(jnp.sum(out, axis=1), 1.0, atol=5e-3)

    print("KERNEL_OK")
</pallas_src>

<mosaic_0001>
module attributes {stable_mosaic.version = 11 : i64} {
  func.func @mlp_kernel(%arg0: i32, %arg1: memref<8x256xbf16, #tpu.memory_space<vmem>>, %arg2: memref<256x128xbf16, #tpu.memory_space<vmem>>, %arg3: memref<1x128xf32, #tpu.memory_space<vmem>>, %arg4: memref<128x64xbf16, #tpu.memory_space<vmem>>, %arg5: memref<1x64xf32, #tpu.memory_space<vmem>>, %arg6: memref<64x128xbf16, #tpu.memory_space<vmem>>, %arg7: memref<1x128xf32, #tpu.memory_space<vmem>>, %arg8: memref<8x128xf32, #tpu.memory_space<vmem>>) attributes {dimension_semantics = [#tpu.dimension_semantics<parallel>], iteration_bounds = array<i64: 1>, scalar_prefetch = 0 : i64, scratch_operands = 0 : i64, tpu.core_type = #tpu.core_type<tc>, window_params = [{transform_indices = @transform_0, window_bounds = array<i64: 8, 256>}, {pipeline_mode = #tpu.pipeline_mode<synchronous>, transform_indices = @transform_1, window_bounds = array<i64: 256, 128>}, {pipeline_mode = #tpu.pipeline_mode<synchronous>, transform_indices = @transform_2, window_bounds = array<i64: 1, 128>}, {pipeline_mode = #tpu.pipeline_mode<synchronous>, transform_indices = @transform_3, window_bounds = array<i64: 128, 64>}, {pipeline_mode = #tpu.pipeline_mode<synchronous>, transform_indices = @transform_4, window_bounds = array<i64: 1, 64>}, {pipeline_mode = #tpu.pipeline_mode<synchronous>, transform_indices = @transform_5, window_bounds = array<i64: 64, 128>}, {pipeline_mode = #tpu.pipeline_mode<synchronous>, transform_indices = @transform_6, window_bounds = array<i64: 1, 128>}, {transform_indices = @transform_7, window_bounds = array<i64: 8, 128>}]} {
    %c0 = arith.constant 0 : index
    %c0_0 = arith.constant 0 : index
    %0 = vector.load %arg1[%c0, %c0_0] : memref<8x256xbf16, #tpu.memory_space<vmem>>, vector<8x256xbf16>
    %c0_1 = arith.constant 0 : index
    %c0_2 = arith.constant 0 : index
    %1 = vector.load %arg2[%c0_1, %c0_2] : memref<256x128xbf16, #tpu.memory_space<vmem>>, vector<256x128xbf16>
    %cst = arith.constant dense<0.000000e+00> : vector<8x128xf32>
    %2 = tpu.matmul %0, %1, %cst {dimension_numbers = #tpu.dot_dimension_numbers<[1], [0], [0], [1], [0, 0, 1, 1], [], []>} : vector<8x256xbf16>, vector<256x128xbf16>, vector<8x128xf32> -> vector<8x128xf32>
    %c0_3 = arith.constant 0 : index
    %c0_4 = arith.constant 0 : index
    %3 = vector.load %arg3[%c0_3, %c0_4] : memref<1x128xf32, #tpu.memory_space<vmem>>, vector<1x128xf32>
    %4 = vector.broadcast %3 : vector<1x128xf32> to vector<8x128xf32>
    %5 = arith.addf %2, %4 : vector<8x128xf32>
    %cst_5 = arith.constant 0.000000e+00 : f32
    %6 = vector.broadcast %cst_5 : f32 to vector<8x128xf32>
    %7 = arith.maximumf %5, %6 : vector<8x128xf32>
    %8 = arith.truncf %7 : vector<8x128xf32> to vector<8x128xbf16>
    %c0_6 = arith.constant 0 : index
    %c0_7 = arith.constant 0 : index
    %9 = vector.load %arg4[%c0_6, %c0_7] : memref<128x64xbf16, #tpu.memory_space<vmem>>, vector<128x64xbf16>
    %cst_8 = arith.constant dense<0.000000e+00> : vector<8x64xf32>
    %10 = tpu.matmul %8, %9, %cst_8 {dimension_numbers = #tpu.dot_dimension_numbers<[1], [0], [0], [1], [0, 0, 1, 1], [], []>} : vector<8x128xbf16>, vector<128x64xbf16>, vector<8x64xf32> -> vector<8x64xf32>
    %c0_9 = arith.constant 0 : index
    %c0_10 = arith.constant 0 : index
    %11 = vector.load %arg5[%c0_9, %c0_10] : memref<1x64xf32, #tpu.memory_space<vmem>>, vector<1x64xf32>
    %12 = vector.broadcast %11 : vector<1x64xf32> to vector<8x64xf32>
    %13 = arith.addf %10, %12 : vector<8x64xf32>
    %cst_11 = arith.constant 0.000000e+00 : f32
    %14 = vector.broadcast %cst_11 : f32 to vector<8x64xf32>
    %15 = arith.maximumf %13, %14 : vector<8x64xf32>
    %16 = arith.truncf %15 : vector<8x64xf32> to vector<8x64xbf16>
    %c0_12 = arith.constant 0 : index
    %c0_13 = arith.constant 0 : index
    %17 = vector.load %arg6[%c0_12, %c0_13] : memref<64x128xbf16, #tpu.memory_space<vmem>>, vector<64x128xbf16>
    %cst_14 = arith.constant dense<0.000000e+00> : vector<8x128xf32>
    %18 = tpu.matmul %16, %17, %cst_14 {dimension_numbers = #tpu.dot_dimension_numbers<[1], [0], [0], [1], [0, 0, 1, 1], [], []>} : vector<8x64xbf16>, vector<64x128xbf16>, vector<8x128xf32> -> vector<8x128xf32>
    %c0_15 = arith.constant 0 : index
    %c0_16 = arith.constant 0 : index
    %19 = vector.load %arg7[%c0_15, %c0_16] : memref<1x128xf32, #tpu.memory_space<vmem>>, vector<1x128xf32>
    %20 = vector.broadcast %19 : vector<1x128xf32> to vector<8x128xf32>
    %21 = arith.addf %18, %20 : vector<8x128xf32>
    %22 = tpu.iota {dimensions = array<i32: 1>} : vector<8x128xi32>
    %c10_i32 = arith.constant 10 : i32
    %23 = vector.broadcast %c10_i32 : i32 to vector<8x128xi32>
    %24 = arith.cmpi slt, %22, %23 : vector<8x128xi32>
    %cst_17 = arith.constant -1.000000e+30 : f32
    %25 = vector.broadcast %cst_17 : f32 to vector<8x128xf32>
    %26 = arith.select %24, %21, %25 : vector<8x128xi1>, vector<8x128xf32>
    %cst_18 = arith.constant dense<0xFF800000> : vector<8xf32>
    %27 = vector.multi_reduction <maximumf>, %26, %cst_18 [1] : vector<8x128xf32> to vector<8xf32>
    %28 = vector.shape_cast %27 : vector<8xf32> to vector<8x1xf32>
    %29 = vector.broadcast %28 : vector<8x1xf32> to vector<8x128xf32>
    %30 = arith.subf %26, %29 : vector<8x128xf32>
    %31 = math.exp %30 : vector<8x128xf32>
    %cst_19 = arith.constant dense<0.000000e+00> : vector<8xf32>
    %32 = vector.multi_reduction <add>, %31, %cst_19 [1] : vector<8x128xf32> to vector<8xf32>
    %33 = vector.shape_cast %32 : vector<8xf32> to vector<8x1xf32>
    %34 = tpu.reciprocal %33 {approx = true} : vector<8x1xf32> -> vector<8x1xf32>
    %35 = vector.broadcast %34 : vector<8x1xf32> to vector<8x128xf32>
    %36 = arith.mulf %31, %35 : vector<8x128xf32>
    %c0_20 = arith.constant 0 : index
    %c0_21 = arith.constant 0 : index
    %37 = vector.load %arg8[%c0_20, %c0_21] : memref<8x128xf32, #tpu.memory_space<vmem>>, vector<8x128xf32>
    tpu.vector_store %arg8[%c0_20, %c0_21], %36 {strides = array<i32>} : memref<8x128xf32, #tpu.memory_space<vmem>>, vector<8x128xf32>,
    return
  }
  func.func @transform_0(%arg0: i32) -> (i32, i32) {
    %c0_i32 = arith.constant 0 : i32
    %c0_i32_0 = arith.constant 0 : i32
    return %arg0, %c0_i32 : i32, i32
  }
  func.func @transform_1(%arg0: i32) -> (i32, i32) {
    %c0_i32 = arith.constant 0 : i32
    %c0_i32_0 = arith.constant 0 : i32
    %c0_i32_1 = arith.constant 0 : i32
    return %c0_i32, %c0_i32_0 : i32, i32
  }
  func.func @transform_2(%arg0: i32) -> (i32, i32) {
    %c0_i32 = arith.constant 0 : i32
    %c0_i32_0 = arith.constant 0 : i32
    %c0_i32_1 = arith.constant 0 : i32
    return %c0_i32, %c0_i32_0 : i32, i32
  }
  func.func @transform_3(%arg0: i32) -> (i32, i32) {
    %c0_i32 = arith.constant 0 : i32
    %c0_i32_0 = arith.constant 0 : i32
    %c0_i32_1 = arith.constant 0 : i32
    return %c0_i32, %c0_i32_0 : i32, i32
  }
  func.func @transform_4(%arg0: i32) -> (i32, i32) {
    %c0_i32 = arith.constant 0 : i32
    %c0_i32_0 = arith.constant 0 : i32
    %c0_i32_1 = arith.constant 0 : i32
    return %c0_i32, %c0_i32_0 : i32, i32
  }
  func.func @transform_5(%arg0: i32) -> (i32, i32) {
    %c0_i32 = arith.constant 0 : i32
    %c0_i32_0 = arith.constant 0 : i32
    %c0_i32_1 = arith.constant 0 : i32
    return %c0_i32, %c0_i32_0 : i32, i32
  }
  func.func @transform_6(%arg0: i32) -> (i32, i32) {
    %c0_i32 = arith.constant 0 : i32
    %c0_i32_0 = arith.constant 0 : i32
    %c0_i32_1 = arith.constant 0 : i32
    return %c0_i32, %c0_i32_0 : i32, i32
  }
  func.func @transform_7(%arg0: i32) -> (i32, i32) {
    %c0_i32 = arith.constant 0 : i32
    %c0_i32_0 = arith.constant 0 : i32
    return %arg0, %c0_i32 : i32, i32
  }
}

</mosaic_0001>

<bundles_post_ra>
// kernel: tpu_custom_call.1
= control target key start
LH: loop header
LB: loop body
LE: loop exit
PB: predicated region body
PF: predicated region fallthrough
CT: control target
= control target key end

     0   :  { %12 = vsyncpa [#allocation3], 0  ;;  %s752_s0 = inlined_call_operand.vmem [shape: bf16[8,256], index: 0, kind: input, shape index: {}]   ;;  %s753_s1 = inlined_call_operand.hbm [shape: bf16[256,128], index: 1, kind: input, shape index: {}]   ;;  %s754_s2 = inlined_call_operand.vmem [shape: f32[1,128], index: 2, kind: input, shape index: {}]   ;;  %s755_s3 = inlined_call_operand.vmem [shape: bf16[128,64], index: 3, kind: input, shape index: {}]   ;;  %s756_s4 = inlined_call_operand.vmem [shape: f32[1,64], index: 4, kind: input, shape index: {}]   ;;  %s757_s5 = inlined_call_operand.vmem [shape: bf16[64,128], index: 5, kind: input, shape index: {}]   ;;  %s758_s6 = inlined_call_operand.vmem [shape: f32[1,128], index: 6, kind: input, shape index: {}]   ;;  %s759_s7 = inlined_call_operand.hbm [shape: f32[8,128], index: 7, kind: output, shape index: {}]  }
   0x1   :  { %13 = vsyncpa [#allocation4], 0  ;;  %s638_s24 = smov [#allocation2]  }
   0x2   :  { %s21_s25 = sshll.u32 %s638_s24, 4  ;;  %s22_s25 = int_to_ptr.vmem [resolvable:$true] %s21_s25 }
   0x3   :  { %s602_s26 = scalar_lea.vmem %s22_s25, 2048  ;;  %p607_p1 = scmp.lt.s32.totalorder %s22_s25, %s22_s25 }
   0x4   :  { %p603_p0 = scmp.ne.s32.totalorder %s22_s25, %s602_s26  ;;  %p608_p2 = scmp.lt.s32.totalorder %s602_s26, %s602_s26 }
   0x6   :  { %p609_p3 = por %p608_p2, %p607_p1 }
   0x8   :  { %p610_p4 = pnand %p609_p3, %p603_p0 }
   0xa   :  { %613 = shalt.err (!%p610_p4)
}
   0xb   :  { %s639_s27 = smov 64   ;;  %s640_s28 = smov 4  }
   0xc   :  { %27 = dma.hbm_to_vmem [thread:$0]  %s753_s1, 2048, %s22_s25, [#allocation3], %s639_s27, %s639_s27, %s640_s28  }
   0xd   :  { %634 = dma.done.wait [#allocation3], 2048  }
   0xe   :  { %635 = vsyncadd [#allocation3], 4294965248  ;;  %v641_v0 = vmov 0.0   ;;  %v560_v1 = vld [vmem:[#allocation2 + $0x78] sm:$0xff]   ;;  %v562_v3 = vld [vmem:[#allocation2 + $0x70] sm:$0xff]   ;;  %vm642_vm0 = vmmov 0   ;;  %v423_v49 = vlaneseq }
   0xf   :  { %522 = vmatprep.subr.bf16.mxu1 %v641_v0  ;;  %v561_v2 = vld [vmem:[#allocation2 + $0x38] sm:$0xff]   ;;  %486 = vmatprep.subr.bf16.mxu0 %v560_v1  ;;  %v563_v4 = vld [vmem:[#allocation2 + $0x30] sm:$0xff]   ;;  %v564_v5 = vld [vmem:[#allocation2 + $0x68] sm:$0xff]   ;;  %vm379_vm1 = vcmask 523264  }
  0x10   :  { %487 = vmatpush3.bf16.msra.mxu0 %v561_v2  ;;  %v565_v6 = vld [vmem:[#allocation2 + $0x28] sm:$0xff]   ;;  %v566_v7 = vld [vmem:[#allocation2 + $0x60] sm:$0xff]   ;;  %v568_v9 = vld [vmem:[#allocation2 + $0x58] sm:$0xff]   ;;  %538 = vmatprep.mubr.msk.bf16.mxu1 %vm642_vm0, %v641_v0  ;;  %v424_v50 = vand.u32 127, %v423_v49 }
  0x11   :  { %488 = vmatprep.subr.bf16.mxu0 %v562_v3  ;;  %v567_v8 = vld [vmem:[#allocation2 + $0x20] sm:$0xff]   ;;  %v569_v10 = vld [vmem:[#allocation2 + $0x18] sm:$0xff]   ;;  %v570_v11 = vld [vmem:[#allocation2 + $0x50] sm:$0xff]  }
  0x12   :  { %v42_v12 = vld [vmem:[%s752_s0] sm:$0xff]  ;;  %v578_v14 = vld [vmem:[%s755_s3 + $0x38] sm:$0xff]   ;;  %v571_v15 = vld [vmem:[#allocation2 + $0x10] sm:$0xff]   ;;  %vm425_vm2 = vcmp.lt.s32.totalorder %v424_v50, 10 }
  0x13   :  { %v454_v13 = vcombine.high %v42_v12, %v42_v12  ;;  %v572_v16 = vld [vmem:[#allocation2 + $0x48] sm:$0xff]   ;;  %523 = vmatpush3.bf16.msra.mxu1 %v578_v14  ;;  %v579_v17 = vld [vmem:[%s755_s3 + $0x30] sm:$0xff]   ;;  %v574_v19 = vld [vmem:[#allocation2 + $0x40] sm:$0xff]   ;;  %v453_v23 = vcombine.low %v42_v12, %v42_v12 }
  0x14   :  { %489 = vmatpush3.bf16.msra.mxu0 %v563_v4  ;;  %v573_v18 = vld [vmem:[#allocation2 + $0x8] sm:$0xff]   ;;  %524 = vmatprep.subr.bf16.mxu1 %v641_v0  ;;  %v575_v21 = vld [vmem:[#allocation2] sm:$0xff]   ;;  %v582_v24 = vld [vmem:[%s755_s3 + $0x18] sm:$0xff]  }
  0x15   :  { %490 = vmatprep.subr.bf16.mxu0 %v564_v5  ;;  %217 = vmatprep.mubr.bf16.mxu0 %v454_v13  ;;  %v580_v20 = vld [vmem:[%s755_s3 + $0x28] sm:$0xff]   ;;  %v581_v22 = vld [vmem:[%s755_s3 + $0x20] sm:$0xff]   ;;  %v583_v25 = vld [vmem:[%s755_s3 + $0x10] sm:$0xff]  }
  0x16   :  { %v584_v26 = vld [vmem:[%s755_s3 + $0x8] sm:$0xff]   ;;  %v585_v27 = vld [vmem:[%s755_s3] sm:$0xff]   ;;  %v586_v28 = vld [vmem:[%s757_s5 + $0x18] sm:$0xff]  }
  0x17   :  { %525 = vmatpush3.bf16.msra.mxu1 %v579_v17  ;;  %v587_v29 = vld [vmem:[%s757_s5 + $0x10] sm:$0xff]   ;;  %v452_v31 = vld [vmem:[%s754_s2] ss:$0 sm:$0xff]  ;;  %v588_v39 = vld [vmem:[%s757_s5 + $0x8] sm:$0xff]  }
  0x18   :  { %491 = vmatpush3.bf16.msra.mxu0 %v565_v6  ;;  %526 = vmatprep.subr.bf16.mxu1 %v641_v0  ;;  %v589_v40 = vld [vmem:[%s757_s5] sm:$0xff]  }
  0x19   :  { %492 = vmatprep.subr.bf16.mxu0 %v566_v7  ;;  %v471_v41 = vld [vmem:[%s756_s4] ss:$0 sm:$0xff]  ;;  %s643_s4 = smov [#allocation5]  }
  0x1a   :  { %v480_v51 = vld [vmem:[%s758_s6] ss:$0 sm:$0xff]  ;;  %s443_s5 = sshll.u32 %s643_s4, 4  ;;  %s444_s5 = int_to_ptr.vmem [resolvable:$true] %s443_s5 }
  0x1b   :  { %527 = vmatpush3.bf16.msra.mxu1 %v580_v20  ;;  %s614_s6 = scalar_lea.vmem %s444_s5, 128  ;;  %p619_p6 = scmp.lt.s32.totalorder %s444_s5, %s444_s5 }
  0x1c   :  { %493 = vmatpush3.bf16.msra.mxu0 %v567_v8  ;;  %528 = vmatprep.subr.bf16.mxu1 %v641_v0  ;;  %p615_p5 = scmp.ne.s32.totalorder %s444_s5, %s614_s6  ;;  %p620_p7 = scmp.lt.s32.totalorder %s614_s6, %s614_s6 }
  0x1d   :  { %494 = vmatprep.subr.bf16.mxu0 %v568_v9 }
  0x1e   :  { %p621_p8 = por %p620_p7, %p619_p6 }
  0x1f   :  { %529 = vmatpush3.bf16.msra.mxu1 %v581_v22 }
  0x20   :  { %495 = vmatpush3.bf16.msra.mxu0 %v569_v10  ;;  %530 = vmatprep.subr.bf16.mxu1 %v641_v0  ;;  %p622_p9 = pnand %p621_p8, %p615_p5 }
  0x21   :  { %496 = vmatprep.subr.bf16.mxu0 %v570_v11 }
  0x23   :  { %531 = vmatpush3.bf16.msra.mxu1 %v582_v24 }
  0x24   :  { %497 = vmatpush3.bf16.msra.mxu0 %v571_v15  ;;  %532 = vmatprep.subr.bf16.mxu1 %v641_v0 }
  0x25   :  { %498 = vmatprep.subr.bf16.mxu0 %v572_v16 }
  0x27   :  { %533 = vmatpush3.bf16.msra.mxu1 %v583_v25 }
  0x28   :  { %499 = vmatpush3.bf16.msra.mxu0 %v573_v18  ;;  %534 = vmatprep.subr.bf16.mxu1 %v641_v0 }
  0x29   :  { %500 = vmatprep.subr.bf16.mxu0 %v574_v19 }
  0x2b   :  { %535 = vmatpush3.bf16.msra.mxu1 %v584_v26 }
  0x2c   :  { %501 = vmatpush3.bf16.msra.mxu0 %v575_v21  ;;  %536 = vmatprep.subr.bf16.mxu1 %v641_v0 }
  0x2d   :  { %542 = vmatprep.subr.bf16.mxu0 %v641_v0 }
  0x2f   :  { %218 = vmatmul.mubr.bf16.vlgmr.msra.gmra.mxu0 %v453_v23  ;;  %537 = vmatpush3.bf16.msra.mxu1 %v585_v27 }
  0x30   :  { %550 = vmatprep.mubr.msk.bf16.mxu0 %vm642_vm0, %v641_v0  ;;  %543 = vmatpush3.bf16.msra.mxu0 %v586_v28 }
  0x31   :  { %544 = vmatprep.subr.bf16.mxu0 %v641_v0 }
  0x34   :  { %545 = vmatpush3.bf16.msra.mxu0 %v587_v29 }
  0x35   :  { %546 = vmatprep.subr.bf16.mxu0 %v641_v0 }
  0x38   :  { %547 = vmatpush3.bf16.msra.mxu0 %v588_v39 }
  0x39   :  { %548 = vmatprep.subr.bf16.mxu0 %v641_v0 }
  0x3c   :  { %549 = vmatpush3.bf16.msra.mxu0 %v589_v40 }
  0xef   :  { %v502_v30 = vpop.f32.mrf.mxu0 }
  0xf1   :  { %v503_v32 = vpop.f32.mrf.mxu0 }
  0xf2   :  { %v504_v33 = vadd.f32 %v503_v32, %v502_v30 }
  0xf3   :  { %v505_v34 = vpop.f32.mrf.mxu0 }
  0xf4   :  { %v220_v35 = vadd.f32 %v504_v33, %v452_v31 }
  0xf5   :  { %v506_v36 = vpop.f32.mrf.mxu0 }
  0xf6   :  { %v225_v37 = vmax.f32 %v220_v35, 0.0 }
  0xf8   :  { %v226_v38 = vpack.c.bf16 %v225_v37, %v225_v37 }
  0xfa   :  { %539 = vmatmul.mubr.bf16.vlgmr.msra.gmra.mxu1 %v226_v38 }
 0x1ba   :  { %v332_v42 = vpop.f32.mrf.mxu1 }
 0x1bb   :  { %v333_v43 = vadd.f32 %v471_v41, %v332_v42 }
 0x1bc   :  { %v540_v44 = vpop.f32.mrf.mxu1 }
 0x1bd   :  { %v338_v45 = vmax.f32 %v333_v43, 0.0 }
 0x1be   :  { %v335_v46 = vpop.f32.mrf.mxu1 }
 0x1bf   :  { %v339_v47 = vpack.c.bf16 %v338_v45, %v338_v45 }
 0x1c0   :  { %v541_v48 = vpop.f32.mrf.mxu1 }
 0x1c1   :  { %551 = vmatmul.mubr.msk.bf16.vlgmr.msra.gmra.mxu0 %vm379_vm1, %v339_v47 }
 0x281   :  { %v417_v52 = vpop.f32.mrf.mxu0 }
 0x282   :  { %v418_v53 = vadd.f32 %v480_v51, %v417_v52 }
 0x283   :  { %v552_v54 = vpop.f32.mrf.mxu0 }
 0x284   :  { %v426_v55 = vsel %vm425_vm2, %v418_v53, -1e+30 }
 0x285   :  { %427 = vmax.xlane.f32.xlu0 %v426_v55  ;;  %v420_v56 = vpop.f32.mrf.mxu0 }
 0x287   :  { %v553_v57 = vpop.f32.mrf.mxu0 }
 0x30e   :  { %v428_v58 = vpop.xlane.xlu0 %427 }
 0x30f   :  { %v429_v59 = vsub.f32 %v426_v55, %v428_v58 }
 0x311   :  { %v430_v60 = vmul.f32 1.442695, %v429_v59 }
 0x313   :  { %590 = vpow2.f32 %v430_v60 }
 0x320   :  { %v591_v61 = vpop.eup %590 }
 0x321   :  { %432 = vadd.xlane.f32.xlu0 %v591_v61 }
 0x3aa   :  { %v433_v62 = vpop.xlane.xlu0 %432 }
 0x3ab   :  { %592 = vrcp.f32 %v433_v62 }
 0x3b8   :  { %v593_v63 = vpop.eup %592 }
 0x3b9   :  { %v435_v0 = vmul.f32 %v593_v63, %v591_v61 }
 0x3bb   :  { %436 = vst [vmem:[#allocation5] sm:$0xff] %v435_v0 }
 0x3bc   :  { %625 = shalt.err (!%p622_p9)
}
 0x3bd   :  { %446 = dma.vmem_to_hbm [thread:$0]  %s444_s5, 128, %s759_s7, [#allocation4]  }
 0x3be   :  { %636 = dma.done.wait [#allocation4], 128  }
 0x3bf   :  { %637 = vsyncadd [#allocation4], 4294967168 }
 0x3c0   :  { %450 = vsyncpa [#allocation3], 1 }
 0x3c1   :  { %451 = vsyncpa [#allocation4], 1 }

</bundles_post_ra>
